<compile_context>
chip_gen: v7x
topology: tpu7x:2x2x1
jax: 0.10.0
libtpu: 0.0.40
codegen_flags: <defaults>
</compile_context>

<pallas_src>
import functools

import jax
import jax.numpy as jnp
from jax.experimental import pallas as pl
from jax.experimental.pallas import tpu as pltpu


LANE = 128          # feature dims inside the packed weights padded to the lane width
SUBLANE = 16        # bf16 sublane packing: batch/M tiles are multiples of this
MAX_TM = 512        # max rows per grid step (amortizes ~0.35us per-step overhead)
SPLIT_ROWS = 128    # above this many rows, keep >= 2 grid steps (v7x megacore)


def _round_up(x, m):
    return ((x + m - 1) // m) * m


def _cdiv(a, b):
    return (a + b - 1) // b


def _stable_softplus(x):
    # Numerically stable softplus using only exp/log (EUP-friendly in-kernel);
    # returns exactly 0 for the -1e9 rho padding.
    return jnp.maximum(x, 0.0) + jnp.log(1.0 + jnp.exp(-jnp.abs(x)))


# ----------------------------- Pallas kernel -------------------------------

def _fused_mlp_kernel(*refs, n_layers, d_in, sample):
    """One grid step: push a (TM, d_in) slab of the batch through the full MLP.

    sample=False refs: (x, w, b, o)
      x : (TM, d_in)       bf16  true-width input slab
      w : (L, Dmax, Dmax)  bf16  packed, transposed, zero-padded weight means
      b : (L, 1, Dmax)     f32   packed, zero-padded bias means
      o : (TM, Dmax)       bf16  lane-dense output slab

    sample=True refs: (x, wm, wr, ew, bm, br, eb, o)
      wm/wr/ew : (L, Dmax, Dmax) f32  weight mean / rho / normal noise
      bm/br/eb : (L, 1, Dmax)    f32  bias   mean / rho / normal noise
      Realized params are computed on-core: p = mean + softplus(rho) * eps.
      rho padding is -1e9 so softplus == 0 there and padded lanes stay exactly 0.
    """
    if sample:
        x_ref, wm_ref, wr_ref, ew_ref, bm_ref, br_ref, eb_ref, o_ref = refs
    else:
        x_ref, wm_ref, bm_ref, o_ref = refs

    h = x_ref[...]                                     # bf16 (TM, d_in)
    for l in range(n_layers):
        if sample:
            w = wm_ref[l] + _stable_softplus(wr_ref[l]) * ew_ref[l]   # f32
            w = w.astype(jnp.bfloat16)
            b = bm_ref[l] + _stable_softplus(br_ref[l]) * eb_ref[l]   # (1, Dmax) f32
        else:
            w = wm_ref[l]                              # bf16 (Dmax, Dmax)
            b = bm_ref[l]                              # f32  (1, Dmax)
        if l == 0 and d_in < w.shape[0]:
            w = w[:d_in, :]                            # only the true input rows
        # bf16 x bf16 -> f32 accumulation on the MXU; f32 epilogue.
        y = jnp.dot(h, w, preferred_element_type=jnp.float32) + b
        if l + 1 < n_layers:
            h = jnp.maximum(y, 0.0).astype(jnp.bfloat16)   # ReLU, stays on-core
        else:
            o_ref[...] = y.astype(o_ref.dtype)             # bf16 lane-dense store


def _const_spec(arr):
    """Grid-invariant operand: full-array block, constant index map, and
    single-buffered (its block never changes across M tiles)."""
    nd = arr.ndim
    idx = lambda i, _nd=nd: (0,) * _nd
    try:
        return pl.BlockSpec(arr.shape, idx, pipeline_mode=pl.Buffered(1))
    except (TypeError, AttributeError):   # very old jax: fall back to default
        return pl.BlockSpec(arr.shape, idx)


def _fused_mlp_call(inputs, *, tm, d_in, n_layers, sample, features_list, batch):
    x_pad = inputs[0]
    bp = x_pad.shape[0]
    dmax = inputs[1].shape[-1]
    grid = (bp // tm,)

    in_specs = [pl.BlockSpec((tm, d_in), lambda i: (i, 0))]
    in_specs += [_const_spec(a) for a in inputs[1:]]
    out_specs = pl.BlockSpec((tm, dmax), lambda i: (i, 0))

    # Advisory cost estimate in TRUE (unpadded) work, not padded dims.
    w_elems = sum(fi * fo for fi, fo in zip(features_list[:-1], features_list[1:]))
    b_elems = sum(features_list[1:])
    flops = 2 * batch * w_elems
    transcendentals = 2 * (w_elems + b_elems) if sample else 0
    param_bytes = (3 * 4 * (w_elems + b_elems)) if sample else (2 * w_elems + 4 * b_elems)
    bytes_accessed = batch * d_in * 2 + param_bytes + batch * features_list[-1] * 2

    # NOTE: all padded operands fit trivially in VMEM here (<1 MiB per step).
    # If features_list ever scales to >= 2048-wide layers, the (L, Dp, Dp)
    # weight slabs approach v7x's 64 MiB VMEM: set
    # pltpu.CompilerParams(vmem_limit_bytes=...) and add a K/N (or per-layer)
    # grid axis before scaling.
    return pl.pallas_call(
        functools.partial(_fused_mlp_kernel, n_layers=n_layers, d_in=d_in,
                          sample=sample),
        out_shape=jax.ShapeDtypeStruct((bp, dmax), jnp.bfloat16),
        grid_spec=pltpu.PrefetchScalarGridSpec(
            num_scalar_prefetch=0,
            grid=grid,
            in_specs=in_specs,
            out_specs=out_specs,
        ),
        compiler_params=pltpu.CompilerParams(
            dimension_semantics=("parallel",)),      # shard M tiles over TCs
        cost_estimate=pl.CostEstimate(
            flops=flops, transcendentals=transcendentals,
            bytes_accessed=bytes_accessed),
    )(*inputs)


# --------------------------- Parameter machinery ----------------------------

def init_bayesian_network_params(key, features_list):
    """Mirrors BayesianLinear.__init__ per layer (torch layout, unpadded):
       weight_mean ~ U(-0.2, 0.2) of (out, in), weight_rho ~ U(-2, 2),
       bias_mean   ~ U(-0.2, 0.2) of (out,),    bias_rho   ~ U(-2, 2)."""
    params = []
    for i in range(len(features_list) - 1):
        fin, fout = features_list[i], features_list[i + 1]
        key, k1, k2, k3, k4 = jax.random.split(key, 5)
        params.append(dict(
            weight_mean=jax.random.uniform(k1, (fout, fin), jnp.float32, -0.2, 0.2),
            weight_rho=jax.random.uniform(k2, (fout, fin), jnp.float32, -2.0, 2.0),
            bias_mean=jax.random.uniform(k3, (fout,), jnp.float32, -0.2, 0.2),
            bias_rho=jax.random.uniform(k4, (fout,), jnp.float32, -2.0, 2.0),
        ))
    return params


def pack_params(raw_params, features_list):
    """One-time repack: transpose weights to (in, out), pad every feature dim to
    Dmax = max(round_up(f, 128)), and stack the layers along a leading axis.
    Mean/bias pads are 0 and rho pads are -1e9 (softplus(-1e9) == 0), so the
    realized weights are exactly zero in the padding and padded lanes never
    contaminate the true outputs (ReLU(0) == 0)."""
    n_layers = len(raw_params)
    dmax = max(_round_up(f, LANE) for f in features_list)
    wm = jnp.zeros((n_layers, dmax, dmax), jnp.float32)
    wr = jnp.full((n_layers, dmax, dmax), -1e9, jnp.float32)
    bm = jnp.zeros((n_layers, 1, dmax), jnp.float32)
    br = jnp.full((n_layers, 1, dmax), -1e9, jnp.float32)
    for l, (lp, fin, fout) in enumerate(zip(raw_params, features_list[:-1],
                                            features_list[1:])):
        wm = wm.at[l, :fin, :fout].set(lp["weight_mean"].T)
        wr = wr.at[l, :fin, :fout].set(lp["weight_rho"].T)
        bm = bm.at[l, 0, :fout].set(lp["bias_mean"])
        br = br.at[l, 0, :fout].set(lp["bias_rho"])
    return dict(wm=wm, wr=wr, bm=bm, br=br, wm_bf16=wm.astype(jnp.bfloat16))


def _choose_m_tiling(batch):
    """Largest M tiles that (a) amortize per-step overhead, (b) keep >= 2 grid
    steps once there is enough work for v7x's two TensorCores, and (c) waste at
    most one sublane group of padded rows on ragged batches."""
    bm = _round_up(max(batch, 1), SUBLANE)
    if bm <= SPLIT_ROWS:
        return bm, 1
    ntiles = max(2, _cdiv(bm, MAX_TM))
    tm = _round_up(_cdiv(bm, ntiles), SUBLANE)
    return tm, _cdiv(bm, tm)


def bayesian_network_forward(packed, features_list, x, use_sample=False,
                             sample_key=None):
    """BayesianNetwork.forward: ReLU(BayesianLinear) for all but the last layer."""
    n_layers = len(features_list) - 1
    batch, d_in = x.shape
    d_out = features_list[-1]

    tm, grid_m = _choose_m_tiling(batch)
    bp = tm * grid_m

    # Rows padded to the tile multiple; the feature dim keeps its true width.
    x_pad = jnp.zeros((bp, d_in), jnp.bfloat16).at[:batch].set(
        x.astype(jnp.bfloat16))

    if use_sample:
        kw, kb = jax.random.split(sample_key)
        eps_w = jax.random.normal(kw, packed["wm"].shape, jnp.float32)
        eps_b = jax.random.normal(kb, packed["bm"].shape, jnp.float32)
        inputs = (x_pad, packed["wm"], packed["wr"], eps_w,
                  packed["bm"], packed["br"], eps_b)
    else:
        inputs = (x_pad, packed["wm_bf16"], packed["bm"])

    out_pad = _fused_mlp_call(inputs, tm=tm, d_in=d_in, n_layers=n_layers,
                              sample=use_sample, features_list=features_list,
                              batch=batch)
    return out_pad[:batch, :d_out].astype(jnp.float32)


# --------------------------------- Driver -----------------------------------

if __name__ == "__main__":
    key = jax.random.PRNGKey(0)
    k_params, k_input, k_big, k_sample = jax.random.split(key, 4)

    # Small MLP consistent with BayesianNetwork(features_list, ...)
    features_list = [16, 32, 32, 4]
    n_layers = len(features_list) - 1
    batch_size = 8

    raw_params = init_bayesian_network_params(k_params, features_list)
    packed = pack_params(raw_params, features_list)

    x = jax.random.normal(k_input, (batch_size, features_list[0]), jnp.float32)

    # use_sample=False path (weight = posterior mean), like eval-mode forward.
    out_mean = bayesian_network_forward(packed, features_list, x,
                                        use_sample=False)
    out_mean = jax.block_until_ready(out_mean)

    # use_sample=True path (reparameterization fused into the kernel).
    out_sampled = bayesian_network_forward(packed, features_list, x,
                                           use_sample=True, sample_key=k_sample)
    out_sampled = jax.block_until_ready(out_sampled)

    # Larger, ragged Monte-Carlo / batch slab: exercises the 2-tile parallel
    # M grid (tm=152, grid=2) with minimal row padding.
    big_batch = 300
    x_big = jax.random.normal(k_big, (big_batch, features_list[0]), jnp.float32)
    out_big = bayesian_network_forward(packed, features_list, x_big,
                                       use_sample=False)
    out_big = jax.block_until_ready(out_big)

    # Pure-JAX reference mirroring the kernel's bf16-handoff / f32-accum numerics.
    def ref_forward_mean(xin):
        h = xin.astype(jnp.bfloat16).astype(jnp.float32)
        for i, lp in enumerate(raw_params):
            w = lp["weight_mean"].astype(jnp.bfloat16).astype(jnp.float32)
            h = jnp.dot(h, w.T, precision=jax.lax.Precision.HIGHEST)
            h = h + lp["bias_mean"]
            if i < len(raw_params) - 1:
                h = jnp.maximum(h, 0.0).astype(jnp.bfloat16).astype(jnp.float32)
        return h.astype(jnp.bfloat16).astype(jnp.float32)

    # Reference for the fused reparameterization (same eps draw as the wrapper).
    def ref_forward_sample(xin, skey):
        kw, kb = jax.random.split(skey)
        eps_w = jax.random.normal(kw, packed["wm"].shape, jnp.float32)
        eps_b = jax.random.normal(kb, packed["bm"].shape, jnp.float32)
        w_real = packed["wm"] + _stable_softplus(packed["wr"]) * eps_w
        b_real = packed["bm"] + _stable_softplus(packed["br"]) * eps_b
        h = xin.astype(jnp.bfloat16).astype(jnp.float32)
        for l in range(n_layers):
            fi, fo = features_list[l], features_list[l + 1]
            wq = w_real[l, :fi, :fo].astype(jnp.bfloat16).astype(jnp.float32)
            h = jnp.dot(h, wq, precision=jax.lax.Precision.HIGHEST)
            h = h + b_real[l, 0, :fo]
            if l + 1 < n_layers:
                h = jnp.maximum(h, 0.0).astype(jnp.bfloat16).astype(jnp.float32)
        return h.astype(jnp.bfloat16).astype(jnp.float32)

    assert out_mean.shape == (batch_size, features_list[-1])
    assert out_sampled.shape == (batch_size, features_list[-1])
    assert out_big.shape == (big_batch, features_list[-1])

    assert jnp.allclose(out_mean, ref_forward_mean(x), atol=2e-2, rtol=2e-2)
    assert jnp.allclose(out_big, ref_forward_mean(x_big), atol=2e-2, rtol=2e-2)
    # Looser tolerance: EUP vs XLA transcendental few-ulp diffs can flip the
    # bf16 rounding of individual realized weights.
    assert jnp.allclose(out_sampled, ref_forward_sample(x, k_sample),
                        atol=1e-1, rtol=5e-2)
    assert bool(jnp.all(jnp.isfinite(out_sampled)))

    print("KERNEL_OK")
</pallas_src>

<mosaic_0001>
module attributes {stable_mosaic.version = 11 : i64} {
  func.func @_fused_mlp_kernel(%arg0: i32, %arg1: memref<16x16xbf16, #tpu.memory_space<vmem>>, %arg2: memref<3x128x128xbf16, #tpu.memory_space<vmem>>, %arg3: memref<3x1x128xf32, #tpu.memory_space<vmem>>, %arg4: memref<16x128xbf16, #tpu.memory_space<vmem>>) attributes {dimension_semantics = [#tpu.dimension_semantics<parallel>], iteration_bounds = array<i64: 1>, scalar_prefetch = 0 : i64, scratch_operands = 0 : i64, tpu.core_type = #tpu.core_type<tc>, window_params = [{transform_indices = @transform_0, window_bounds = array<i64: 16, 16>}, {pipeline_mode = #tpu.pipeline_mode<synchronous>, transform_indices = @transform_1, window_bounds = array<i64: 3, 128, 128>}, {pipeline_mode = #tpu.pipeline_mode<synchronous>, transform_indices = @transform_2, window_bounds = array<i64: 3, 1, 128>}, {transform_indices = @transform_3, window_bounds = array<i64: 16, 128>}]} {
    %c0 = arith.constant 0 : index
    %c0_0 = arith.constant 0 : index
    %0 = vector.load %arg1[%c0, %c0_0] : memref<16x16xbf16, #tpu.memory_space<vmem>>, vector<16x16xbf16>
    %c0_1 = arith.constant 0 : index
    %c0_2 = arith.constant 0 : index
    %c0_3 = arith.constant 0 : index
    %1 = vector.load %arg2[%c0_1, %c0_2, %c0_3] : memref<3x128x128xbf16, #tpu.memory_space<vmem>>, vector<1x128x128xbf16>
    %2 = vector.shape_cast %1 : vector<1x128x128xbf16> to vector<128x128xbf16>
    %c0_4 = arith.constant 0 : index
    %c0_5 = arith.constant 0 : index
    %c0_6 = arith.constant 0 : index
    %3 = vector.load %arg3[%c0_4, %c0_5, %c0_6] : memref<3x1x128xf32, #tpu.memory_space<vmem>>, vector<1x1x128xf32>
    %4 = vector.shape_cast %3 : vector<1x1x128xf32> to vector<1x128xf32>
    %5 = vector.extract_strided_slice %2 {offsets = [0, 0], sizes = [16, 128], strides = [1, 1]} : vector<128x128xbf16> to vector<16x128xbf16>
    %cst = arith.constant dense<0.000000e+00> : vector<16x128xf32>
    %6 = tpu.matmul %0, %5, %cst {dimension_numbers = #tpu.dot_dimension_numbers<[1], [0], [0], [1], [0, 0, 1, 1], [], []>} : vector<16x16xbf16>, vector<16x128xbf16>, vector<16x128xf32> -> vector<16x128xf32>
    %7 = vector.broadcast %4 : vector<1x128xf32> to vector<16x128xf32>
    %8 = arith.addf %6, %7 : vector<16x128xf32>
    %cst_7 = arith.constant 0.000000e+00 : f32
    %9 = vector.broadcast %cst_7 : f32 to vector<16x128xf32>
    %10 = arith.maximumf %8, %9 : vector<16x128xf32>
    %11 = arith.truncf %10 : vector<16x128xf32> to vector<16x128xbf16>
    %c1 = arith.constant 1 : index
    %c0_8 = arith.constant 0 : index
    %c0_9 = arith.constant 0 : index
    %12 = vector.load %arg2[%c1, %c0_8, %c0_9] : memref<3x128x128xbf16, #tpu.memory_space<vmem>>, vector<1x128x128xbf16>
    %13 = vector.shape_cast %12 : vector<1x128x128xbf16> to vector<128x128xbf16>
    %c1_10 = arith.constant 1 : index
    %c0_11 = arith.constant 0 : index
    %c0_12 = arith.constant 0 : index
    %14 = vector.load %arg3[%c1_10, %c0_11, %c0_12] : memref<3x1x128xf32, #tpu.memory_space<vmem>>, vector<1x1x128xf32>
    %15 = vector.shape_cast %14 : vector<1x1x128xf32> to vector<1x128xf32>
    %cst_13 = arith.constant dense<0.000000e+00> : vector<16x128xf32>
    %16 = tpu.matmul %11, %13, %cst_13 {dimension_numbers = #tpu.dot_dimension_numbers<[1], [0], [0], [1], [0, 0, 1, 1], [], []>} : vector<16x128xbf16>, vector<128x128xbf16>, vector<16x128xf32> -> vector<16x128xf32>
    %17 = vector.broadcast %15 : vector<1x128xf32> to vector<16x128xf32>
    %18 = arith.addf %16, %17 : vector<16x128xf32>
    %cst_14 = arith.constant 0.000000e+00 : f32
    %19 = vector.broadcast %cst_14 : f32 to vector<16x128xf32>
    %20 = arith.maximumf %18, %19 : vector<16x128xf32>
    %21 = arith.truncf %20 : vector<16x128xf32> to vector<16x128xbf16>
    %c2 = arith.constant 2 : index
    %c0_15 = arith.constant 0 : index
    %c0_16 = arith.constant 0 : index
    %22 = vector.load %arg2[%c2, %c0_15, %c0_16] : memref<3x128x128xbf16, #tpu.memory_space<vmem>>, vector<1x128x128xbf16>
    %23 = vector.shape_cast %22 : vector<1x128x128xbf16> to vector<128x128xbf16>
    %c2_17 = arith.constant 2 : index
    %c0_18 = arith.constant 0 : index
    %c0_19 = arith.constant 0 : index
    %24 = vector.load %arg3[%c2_17, %c0_18, %c0_19] : memref<3x1x128xf32, #tpu.memory_space<vmem>>, vector<1x1x128xf32>
    %25 = vector.shape_cast %24 : vector<1x1x128xf32> to vector<1x128xf32>
    %cst_20 = arith.constant dense<0.000000e+00> : vector<16x128xf32>
    %26 = tpu.matmul %21, %23, %cst_20 {dimension_numbers = #tpu.dot_dimension_numbers<[1], [0], [0], [1], [0, 0, 1, 1], [], []>} : vector<16x128xbf16>, vector<128x128xbf16>, vector<16x128xf32> -> vector<16x128xf32>
    %27 = vector.broadcast %25 : vector<1x128xf32> to vector<16x128xf32>
    %28 = arith.addf %26, %27 : vector<16x128xf32>
    %29 = arith.truncf %28 : vector<16x128xf32> to vector<16x128xbf16>
    %c0_21 = arith.constant 0 : index
    %c0_22 = arith.constant 0 : index
    %30 = vector.load %arg4[%c0_21, %c0_22] : memref<16x128xbf16, #tpu.memory_space<vmem>>, vector<16x128xbf16>
    tpu.vector_store %arg4[%c0_21, %c0_22], %29 {strides = array<i32>} : memref<16x128xbf16, #tpu.memory_space<vmem>>, vector<16x128xbf16>,
    return
  }
  func.func @transform_0(%arg0: i32) -> (i32, i32) {
    %c0_i32 = arith.constant 0 : i32
    %c0_i32_0 = arith.constant 0 : i32
    return %arg0, %c0_i32 : i32, i32
  }
  func.func @transform_1(%arg0: i32) -> (i32, i32, i32) {
    %c0_i32 = arith.constant 0 : i32
    %c0_i32_0 = arith.constant 0 : i32
    %c0_i32_1 = arith.constant 0 : i32
    %c0_i32_2 = arith.constant 0 : i32
    return %c0_i32, %c0_i32_0, %c0_i32_1 : i32, i32, i32
  }
  func.func @transform_2(%arg0: i32) -> (i32, i32, i32) {
    %c0_i32 = arith.constant 0 : i32
    %c0_i32_0 = arith.constant 0 : i32
    %c0_i32_1 = arith.constant 0 : i32
    %c0_i32_2 = arith.constant 0 : i32
    return %c0_i32, %c0_i32_0, %c0_i32_1 : i32, i32, i32
  }
  func.func @transform_3(%arg0: i32) -> (i32, i32) {
    %c0_i32 = arith.constant 0 : i32
    %c0_i32_0 = arith.constant 0 : i32
    return %arg0, %c0_i32 : i32, i32
  }
}

</mosaic_0001>

<bundles_post_ra>
// kernel: tpu_custom_call.1
= control target key start
LH: loop header
LB: loop body
LE: loop exit
PB: predicated region body
PF: predicated region fallthrough
CT: control target
= control target key end

     0   :  { %8 = vsyncpa [#allocation3], 0  ;;  %s670_s0 = inlined_call_operand.hbm [shape: bf16[16,16], index: 0, kind: input, shape index: {}]   ;;  %s671_s1 = inlined_call_operand.hbm [shape: bf16[3,128,128], index: 1, kind: input, shape index: {}]   ;;  %s672_s2 = inlined_call_operand.vmem [shape: f32[3,1,128], index: 2, kind: input, shape index: {}]   ;;  %s673_s3 = inlined_call_operand.hbm [shape: bf16[16,128], index: 3, kind: output, shape index: {}]  }
   0x1   :  { %9 = vsyncpa [#allocation6], 0 }
   0x2   :  { %10 = vsyncpa [#allocation4], 0  ;;  %s569_s12 = smov [#allocation2]   ;;  %s497_s16 = scalar_lea.hbm %s670_s0, 128 }
   0x3   :  { %s16_s13 = sshll.u32 %s569_s12, 4  ;;  %p498_p0 = scmp.ne.s32.totalorder %s670_s0, %s497_s16  ;;  %s17_s13 = int_to_ptr.vmem [resolvable:$true] %s16_s13 }
   0x4   :  { %p501_p1 = scmp.lt.u32.totalorder %s497_s16, %s670_s0 }
   0x6   :  { %p503_p2 = pnand %p501_p1, %p498_p0 }
   0x8   :  { %506 = shalt.err (!%p503_p2)
}
   0x9   :  { %s507_s21 = scalar_lea.vmem %s17_s13, 128  ;;  %p512_p4 = scmp.lt.s32.totalorder %s17_s13, %s17_s13 }
   0xa   :  { %p508_p3 = scmp.ne.s32.totalorder %s17_s13, %s507_s21  ;;  %p513_p5 = scmp.lt.s32.totalorder %s507_s21, %s507_s21 }
   0xc   :  { %p514_p6 = por %p513_p5, %p512_p4 }
   0xe   :  { %p515_p7 = pnand %p514_p6, %p508_p3 }
  0x10   :  { %518 = shalt.err (!%p515_p7)
}
  0x11   :  { %s570_s22 = smov 64   ;;  %s571_s23 = smov 4  }
  0x12   :  { %22 = dma.hbm_to_vmem [thread:$0]  %s670_s0, 128, %s17_s13, [#allocation3], %s570_s22, %s570_s22, %s571_s23  }
  0x13   :  { %s572_s26 = smov [#allocation5]   ;;  %s519_s30 = scalar_lea.hbm %s671_s1, 3072 }
  0x14   :  { %s28_s27 = sshll.u32 %s572_s26, 4  ;;  %p520_p8 = scmp.ne.s32.totalorder %s671_s1, %s519_s30  ;;  %s29_s27 = int_to_ptr.vmem [resolvable:$true] %s28_s27 }
  0x15   :  { %p523_p9 = scmp.lt.u32.totalorder %s519_s30, %s671_s1 }
  0x17   :  { %p525_p10 = pnand %p523_p9, %p520_p8 }
  0x19   :  { %528 = shalt.err (!%p525_p10)
}
  0x1a   :  { %s529_s8 = scalar_lea.vmem %s29_s27, 3072  ;;  %p534_p12 = scmp.lt.s32.totalorder %s29_s27, %s29_s27 }
  0x1b   :  { %p530_p11 = scmp.ne.s32.totalorder %s29_s27, %s529_s8  ;;  %p535_p13 = scmp.lt.s32.totalorder %s529_s8, %s529_s8 }
  0x1d   :  { %p536_p0 = por %p535_p13, %p534_p12 }
  0x1f   :  { %p537_p1 = pnand %p536_p0, %p530_p11 }
  0x21   :  { %540 = shalt.err (!%p537_p1)
}
  0x22   :  { %34 = dma.hbm_to_vmem [thread:$0]  %s671_s1, 3072, %s29_s27, [#allocation6], %s570_s22, %s570_s22, %s571_s23  }
  0x23   :  { %563 = dma.done.wait [#allocation3], 128  }
  0x24   :  { %564 = vsyncadd [#allocation3], 4294967168 }
  0x25   :  { %565 = dma.done.wait [#allocation6], 3072  }
  0x26   :  { %566 = vsyncadd [#allocation6], 4294964224  ;;  %v573_v0 = vmov 0.0   ;;  %vm574_vm0 = vmmov 0   ;;  %v479_v1 = vld [vmem:[#allocation5] sm:$0xff]   ;;  %v480_v2 = vld [vmem:[#allocation2] sm:$0xff]  }
  0x27   :  { %426 = vmatprep.subr.bf16.mxu0 %v573_v0  ;;  %428 = vmatprep.mubr.msk.bf16.mxu0 %vm574_vm0, %v573_v0  ;;  %vm66_vm1 = vcmask 130048   ;;  %v481_v3 = vld [vmem:[#allocation5 + $0x40] sm:$0xff]   ;;  %v482_v4 = vld [vmem:[#allocation5 + $0x48] sm:$0xff]   ;;  %v483_v5 = vld [vmem:[#allocation5 + $0x50] sm:$0xff]   ;;  %s575_s15 = smov [#allocation7]  }
  0x28   :  { %432 = vmatprep.subr.bf16.mxu1 %v573_v0  ;;  %448 = vmatprep.mubr.msk.bf16.mxu1 %vm574_vm0, %v573_v0  ;;  %v484_v6 = vld [vmem:[#allocation5 + $0x58] sm:$0xff]   ;;  %v485_v7 = vld [vmem:[#allocation5 + $0x60] sm:$0xff]   ;;  %v486_v8 = vld [vmem:[#allocation5 + $0x68] sm:$0xff]   ;;  %s360_s16 = sshll.u32 %s575_s15, 4  ;;  %s361_s16 = int_to_ptr.vmem [resolvable:$true] %s360_s16 }
  0x29   :  { %427 = vmatpush3.bf16.msra.mxu0 %v479_v1  ;;  %433 = vmatpush3.bf16.msra.mxu1 %v481_v3  ;;  %v487_v9 = vld [vmem:[#allocation5 + $0x70] sm:$0xff]   ;;  %v488_v10 = vld [vmem:[#allocation5 + $0x78] sm:$0xff]   ;;  %v489_v11 = vld [vmem:[#allocation5 + $0x80] sm:$0xff]   ;;  %s541_s17 = scalar_lea.vmem %s361_s16, 128  ;;  %p546_p3 = scmp.lt.s32.totalorder %s361_s16, %s361_s16 }
  0x2a   :  { %452 = vmatprep.subr.bf16.mxu0 %v573_v0  ;;  %434 = vmatprep.subr.bf16.mxu1 %v573_v0  ;;  %v490_v12 = vld [vmem:[#allocation5 + $0x88] sm:$0xff]   ;;  %v491_v13 = vld [vmem:[#allocation5 + $0x90] sm:$0xff]   ;;  %v492_v14 = vld [vmem:[#allocation5 + $0x98] sm:$0xff]   ;;  %p542_p2 = scmp.ne.s32.totalorder %s361_s16, %s541_s17  ;;  %p547_p4 = scmp.lt.s32.totalorder %s541_s17, %s541_s17 }
  0x2b   :  { %v493_v15 = vld [vmem:[#allocation5 + $0xa0] sm:$0xff]   ;;  %v494_v16 = vld [vmem:[#allocation5 + $0xa8] sm:$0xff]   ;;  %v373_v17 = vld [vmem:[%s672_s2] ss:$0 sm:$0xff] }
  0x2c   :  { %429 = vmatmul.mubr.msk.bf16.vlgmr.msra.gmra.mrb[0].mxu0 %vm66_vm1, %v480_v2  ;;  %v495_v27 = vld [vmem:[#allocation5 + $0xb0] sm:$0xff]   ;;  %v496_v28 = vld [vmem:[#allocation5 + $0xb8] sm:$0xff]   ;;  %p548_p5 = por %p547_p4, %p546_p3 }
  0x2d   :  { %468 = vmatprep.mubr.msk.bf16.mxu0 %vm574_vm0, %v573_v0  ;;  %435 = vmatpush3.bf16.msra.mxu1 %v482_v4  ;;  %v378_v29 = vld [vmem:[%s672_s2 + $0x1] ss:$0 sm:$0xff]  ;;  %v388_v39 = vld [vmem:[%s672_s2 + $0x2] ss:$0 sm:$0xff] }
  0x2e   :  { %436 = vmatprep.subr.bf16.mxu1 %v573_v0  ;;  %453 = vmatpush3.bf16.msra.mxu0 %v489_v11  ;;  %p549_p6 = pnand %p548_p5, %p542_p2 }
  0x2f   :  { %454 = vmatprep.subr.bf16.mxu0 %v573_v0 }
  0x31   :  { %437 = vmatpush3.bf16.msra.mxu1 %v483_v5 }
  0x32   :  { %438 = vmatprep.subr.bf16.mxu1 %v573_v0  ;;  %455 = vmatpush3.bf16.msra.mxu0 %v490_v12 }
  0x33   :  { %456 = vmatprep.subr.bf16.mxu0 %v573_v0 }
  0x35   :  { %439 = vmatpush3.bf16.msra.mxu1 %v484_v6 }
  0x36   :  { %440 = vmatprep.subr.bf16.mxu1 %v573_v0  ;;  %457 = vmatpush3.bf16.msra.mxu0 %v491_v13 }
  0x37   :  { %458 = vmatprep.subr.bf16.mxu0 %v573_v0 }
  0x39   :  { %441 = vmatpush3.bf16.msra.mxu1 %v485_v7 }
  0x3a   :  { %442 = vmatprep.subr.bf16.mxu1 %v573_v0  ;;  %459 = vmatpush3.bf16.msra.mxu0 %v492_v14 }
  0x3b   :  { %460 = vmatprep.subr.bf16.mxu0 %v573_v0 }
  0x3d   :  { %443 = vmatpush3.bf16.msra.mxu1 %v486_v8 }
  0x3e   :  { %444 = vmatprep.subr.bf16.mxu1 %v573_v0  ;;  %461 = vmatpush3.bf16.msra.mxu0 %v493_v15 }
  0x3f   :  { %462 = vmatprep.subr.bf16.mxu0 %v573_v0 }
  0x41   :  { %445 = vmatpush3.bf16.msra.mxu1 %v487_v9 }
  0x42   :  { %446 = vmatprep.subr.bf16.mxu1 %v573_v0  ;;  %463 = vmatpush3.bf16.msra.mxu0 %v494_v16 }
  0x43   :  { %464 = vmatprep.subr.bf16.mxu0 %v573_v0 }
  0x45   :  { %447 = vmatpush3.bf16.msra.mxu1 %v488_v10 }
  0x46   :  { %465 = vmatpush3.bf16.msra.mxu0 %v495_v27 }
  0x47   :  { %466 = vmatprep.subr.bf16.mxu0 %v573_v0 }
  0x4a   :  { %467 = vmatpush3.bf16.msra.mxu0 %v496_v28 }
  0xff   :  { %v104_v18 = vpop.f32.mrb[0].mxu0 }
 0x100   :  { %v105_v19 = vadd.f32 %v373_v17, %v104_v18  ;;  %v430_v20 = vpop.f32.mrb[1].mxu0 }
 0x101   :  { %v107_v21 = vpop.f32.mrb[2].mxu0 }
 0x102   :  { %v108_v22 = vadd.f32 %v373_v17, %v107_v21  ;;  %v431_v23 = vpop.f32.mrb[3].mxu0  ;;  %v111_v24 = vmax.f32 %v105_v19, 0.0 }
 0x104   :  { %v112_v25 = vmax.f32 %v108_v22, 0.0 }
 0x106   :  { %v113_v26 = vpack.c.bf16 %v112_v25, %v111_v24 }
 0x108   :  { %449 = vmatmul.mubr.bf16.vlgmr.msra.gmra.mrb[0].mxu1 %v113_v26 }
 0x1db   :  { %v221_v30 = vpop.f32.mrb[0].mxu1 }
 0x1dc   :  { %v222_v31 = vadd.f32 %v378_v29, %v221_v30  ;;  %v450_v32 = vpop.f32.mrb[1].mxu1 }
 0x1dd   :  { %v224_v33 = vpop.f32.mrb[2].mxu1 }
 0x1de   :  { %v225_v34 = vadd.f32 %v378_v29, %v224_v33  ;;  %v451_v35 = vpop.f32.mrb[3].mxu1  ;;  %v228_v36 = vmax.f32 %v222_v31, 0.0 }
 0x1e0   :  { %v229_v37 = vmax.f32 %v225_v34, 0.0 }
 0x1e2   :  { %v230_v38 = vpack.c.bf16 %v229_v37, %v228_v36 }
 0x1e4   :  { %469 = vmatmul.mubr.bf16.vlgmr.msra.gmra.mrb[4].mxu0 %v230_v38 }
 0x2b7   :  { %v338_v40 = vpop.f32.mrb[4].mxu0 }
 0x2b8   :  { %v470_v41 = vpop.f32.mrb[5].mxu0  ;;  %v339_v43 = vadd.f32 %v388_v39, %v338_v40 }
 0x2b9   :  { %v341_v42 = vpop.f32.mrb[6].mxu0 }
 0x2ba   :  { %v342_v44 = vadd.f32 %v388_v39, %v341_v42  ;;  %v471_v45 = vpop.f32.mrb[7].mxu0 }
 0x2bc   :  { %v404_v46 = vpack.c.bf16 %v342_v44, %v339_v43 }
 0x2be   :  { %405 = vst [vmem:[#allocation7] sm:$0xff] %v404_v46  }
 0x2bf   :  { %552 = shalt.err (!%p549_p6)
}
 0x2c0   :  { %s553_s19 = scalar_lea.hbm %s673_s3, 128 }
 0x2c1   :  { %p554_p7 = scmp.ne.s32.totalorder %s673_s3, %s553_s19  ;;  %p557_p8 = scmp.lt.u32.totalorder %s553_s19, %s673_s3 }
 0x2c3   :  { %p559_p9 = pnand %p557_p8, %p554_p7 }
 0x2c5   :  { %562 = shalt.err (!%p559_p9)
}
 0x2c6   :  { %366 = dma.vmem_to_hbm [thread:$0]  %s361_s16, 128, %s673_s3, [#allocation4], %s570_s22, %s570_s22, %s571_s23  }
 0x2c7   :  { %567 = dma.done.wait [#allocation4], 128  }
 0x2c8   :  { %568 = vsyncadd [#allocation4], 4294967168 }
 0x2c9   :  { %370 = vsyncpa [#allocation3], 1 }
 0x2ca   :  { %371 = vsyncpa [#allocation6], 1 }
 0x2cb   :  { %372 = vsyncpa [#allocation4], 1 }

</bundles_post_ra>
